<compile_context>
chip_gen: v5e
topology: v5e:2x2
jax: 0.10.0
libtpu: 0.0.40
codegen_flags: <defaults>
</compile_context>

<pallas_src>
import functools

import jax
import jax.numpy as jnp
from jax.experimental import pallas as pl
from jax.experimental.pallas import tpu as pltpu


_LANE = 128
_MiB = 1024 * 1024
_FUSED_MAX_NODES = 2048


# ---------------------------------------------------------------------------
# Small helpers
# ---------------------------------------------------------------------------
def _round_up(x, m):
    return ((x + m - 1) // m) * m


def _pad2(x, shape, dtype):
    out = jnp.zeros(shape, dtype)
    return out.at[: x.shape[0], : x.shape[1]].set(x.astype(dtype))


def _vmem_capacity_bytes():
    """Per-core VMEM capacity; conservative fallback if the query fails."""
    try:
        info = pltpu.get_tpu_info()
        for attr in ("vmem_capacity_bytes", "vmem_size_bytes", "vmem_bytes"):
            v = getattr(info, attr, None)
            if v:
                return int(v)
    except Exception:
        pass
    return 64 * _MiB  # v7x per-core VMEM (smallest of the three generations)


_BUFFERED1 = None  # None = not probed yet, False = unsupported, else Buffered(1)


def _buffered1():
    """Probe once whether pipeline_mode=pl.Buffered(1) is supported."""
    global _BUFFERED1
    if _BUFFERED1 is None:
        try:
            mode = pl.Buffered(1)

            def _probe(x_ref, o_ref):
                o_ref[...] = x_ref[...] + 1.0

            x = jnp.zeros((8, _LANE), jnp.float32)
            out = pl.pallas_call(
                _probe,
                out_shape=jax.ShapeDtypeStruct((8, _LANE), jnp.float32),
                grid=(1,),
                in_specs=[pl.BlockSpec((8, _LANE), lambda i: (0, 0),
                                       pipeline_mode=mode)],
                out_specs=pl.BlockSpec((8, _LANE), lambda i: (0, 0)),
            )(x)
            jax.block_until_ready(out)
            _BUFFERED1 = mode
        except Exception:
            _BUFFERED1 = False
    return None if _BUFFERED1 is False else _BUFFERED1


def _resident_spec(block_shape, index_map):
    """BlockSpec for a grid-invariant operand; single-buffered if supported."""
    mode = _buffered1()
    if mode is not None:
        return pl.BlockSpec(block_shape, index_map, pipeline_mode=mode)
    return pl.BlockSpec(block_shape, index_map)


# ---------------------------------------------------------------------------
# Tile / path selection
# ---------------------------------------------------------------------------
def _choose_tm(n_pad, tk, f_rhs, budget):
    """Largest row tile that fits the VMEM budget and leaves >= 2 row blocks
    (so dimension_semantics=('parallel', ...) can use both v7x TensorCores)."""
    for tm in (512, 256, 128, 64, 32, 16, 8):
        if n_pad % tm != 0:
            continue
        if n_pad // tm < 2:
            continue
        need = (2 * tm * tk * 2                     # A block (bf16), 2 buffers
                + 2 * tk * f_rhs * 2                # RHS block (bf16), 2 buffers
                + 2 * tm * 4                        # d^-1/2 block
                + f_rhs * _LANE * 2 + _LANE * 4     # resident W + bias
                + 2 * tm * _LANE * 4                # out block, 2 buffers
                + tm * max(f_rhs, _LANE) * 4)       # f32 accumulator scratch
        if need <= budget:
            return tm
    return 8


def _fused_fits(n_pad, budget):
    """Conservative fused-path working-set estimate (feature widths <= 128,
    residents counted double-buffered in case Buffered(1) is unavailable)."""
    tm = n_pad // 2
    resident = (n_pad * n_pad * 2            # 0/1 adjacency, bf16
                + n_pad * _LANE * 2          # scaled features
                + n_pad * 4                  # d^-1/2
                + 2 * _LANE * _LANE * 2      # W1, W2
                + 2 * _LANE * 4)             # b1, b2
    blocked = 2 * (tm * n_pad * 2 + tm * 4 + tm * _LANE * 4)
    temps = n_pad * _LANE * 10 + tm * _LANE * 8
    return 2 * resident + blocked + temps <= budget // 2


def prepare_graph(adj, *, force_tiled=False, max_tk=512):
    """One-time graph preprocessing (hoisted out of the per-forward path).

    `adj` is the raw 0/1 adjacency; norm='both' is applied inside the kernels
    via exact f32 D^-1/2 scales, so A itself is stored as an exact 0/1 bf16
    mask (no quantization error on A_hat)."""
    n = int(adj.shape[0])
    adj = adj.astype(jnp.float32)
    deg = jnp.sum(adj, axis=1)
    safe_deg = jnp.where(deg > 0, deg, 1.0)
    dinv = jnp.where(deg > 0, 1.0 / jnp.sqrt(safe_deg), 0.0)

    vmem = _vmem_capacity_bytes()
    budget = (vmem * 7) // 10          # working-set budget (gen-aware)
    vmem_limit = (vmem * 85) // 100    # scoped vmem_limit_bytes (gen-aware)
    _buffered1()                       # resolve the probe eagerly (outside jit)

    fused = (not force_tiled) and n <= _FUSED_MAX_NODES
    if fused:
        n_pad = _round_up(max(n, 32), 32)    # 2 row blocks, each multiple of 16
        fused = _fused_fits(n_pad, budget)
    if not fused:
        tk = max(_LANE, (min(max_tk, _round_up(n, _LANE)) // _LANE) * _LANE)
        n_pad = _round_up(n, tk)
    else:
        tk = None

    a_pad = jnp.zeros((n_pad, n_pad), jnp.bfloat16)
    a_pad = a_pad.at[:n, :n].set(adj.astype(jnp.bfloat16))      # exact 0/1
    dinv_pad = jnp.zeros((n_pad, 1), jnp.float32)
    dinv_pad = dinv_pad.at[:n, 0].set(dinv)

    return {"a": a_pad, "dinv": dinv_pad, "n": n, "n_pad": n_pad, "tk": tk,
            "fused": fused, "budget": budget, "vmem_limit": vmem_limit}


# ---------------------------------------------------------------------------
# Kernels
# ---------------------------------------------------------------------------
def _gcn_layer_kernel(a_ref, x_ref, dinv_ref, w_ref, b_ref, o_ref, acc_ref,
                      *, scale_out):
    # a_ref   : (tm, tk)   bf16 0/1 adjacency block
    # x_ref   : (tk, f_rhs) bf16 RHS block (already scaled by d_j^-1/2)
    # dinv_ref: (tm, 1)    f32 row scales d_i^-1/2
    # w_ref   : (f_rhs, f_pad) bf16 resident weight (epilogue matmul)
    # b_ref   : (1, f_pad) f32 resident bias
    # o_ref   : (tm, f_pad) output block (bf16 for layer 1, f32 for layer 2)
    # acc_ref : (tm, f_rhs) f32 accumulator over the K (node) axis
    k = pl.program_id(1)

    @pl.when(k == 0)
    def _():
        acc_ref[...] = jnp.zeros_like(acc_ref)

    acc_ref[...] += jnp.dot(a_ref[...], x_ref[...],
                            preferred_element_type=jnp.float32)

    @pl.when(k == pl.num_programs(1) - 1)
    def _():
        z = (dinv_ref[...] * acc_ref[...]).astype(jnp.bfloat16)
        h = jnp.maximum(
            jnp.dot(z, w_ref[...], preferred_element_type=jnp.float32)
            + b_ref[...], 0.0)
        if scale_out:                  # pre-scale for the next layer (f32)
            h = dinv_ref[...] * h
        o_ref[...] = h.astype(o_ref.dtype)


def _fused_two_layer_kernel(a_full_ref, xs_ref, dinv_ref, w1_ref, b1_ref,
                            w2_ref, b2_ref, a_blk_ref, dinv_blk_ref, o_ref):
    # Whole two-layer forward for small graphs; layer 1 is recomputed per row
    # block (cheap: f_in is tiny) so both v7x TensorCores get independent work.
    f32 = jnp.float32
    ax = jnp.dot(a_full_ref[...], xs_ref[...], preferred_element_type=f32)
    z1 = (dinv_ref[...] * ax).astype(jnp.bfloat16)
    h1 = jnp.maximum(
        jnp.dot(z1, w1_ref[...], preferred_element_type=f32) + b1_ref[...], 0.0)
    h1s = (dinv_ref[...] * h1).astype(jnp.bfloat16)

    z2 = (dinv_blk_ref[...]
          * jnp.dot(a_blk_ref[...], h1s, preferred_element_type=f32)
          ).astype(jnp.bfloat16)
    o_ref[...] = jnp.maximum(
        jnp.dot(z2, w2_ref[...], preferred_element_type=f32) + b2_ref[...], 0.0
    ).astype(o_ref.dtype)


# ---------------------------------------------------------------------------
# pallas_call wrappers
# ---------------------------------------------------------------------------
def _gcn_layer_tiled(a, xs, dinv, w, b, *, n_pad, tm, tk, f_pad, scale_out,
                     out_dtype, vmem_limit):
    f_rhs = xs.shape[1]
    grid = (n_pad // tm, n_pad // tk)
    kernel = functools.partial(_gcn_layer_kernel, scale_out=scale_out)
    return pl.pallas_call(
        kernel,
        out_shape=jax.ShapeDtypeStruct((n_pad, f_pad), out_dtype),
        grid_spec=pltpu.PrefetchScalarGridSpec(
            num_scalar_prefetch=0,
            grid=grid,
            in_specs=[
                pl.BlockSpec((tm, tk), lambda i, k: (i, k)),        # A block
                pl.BlockSpec((tk, f_rhs), lambda i, k: (k, 0)),     # RHS block
                pl.BlockSpec((tm, 1), lambda i, k: (i, 0)),         # d^-1/2 rows
                _resident_spec((f_rhs, f_pad), lambda i, k: (0, 0)),  # W
                _resident_spec((1, f_pad), lambda i, k: (0, 0)),      # bias
            ],
            out_specs=pl.BlockSpec((tm, f_pad), lambda i, k: (i, 0)),
            scratch_shapes=[pltpu.VMEM((tm, f_rhs), jnp.float32)],
        ),
        compiler_params=pltpu.CompilerParams(
            dimension_semantics=("parallel", "arbitrary"),
            vmem_limit_bytes=vmem_limit),
    )(a, xs, dinv, w, b)


def _fused_forward(a, xs, dinv, w1, b1, w2, b2, *, n_pad, f_pad, vmem_limit):
    tm = n_pad // 2                   # 2 row blocks -> both v7x TCs get work
    f_in = xs.shape[1]
    return pl.pallas_call(
        _fused_two_layer_kernel,
        out_shape=jax.ShapeDtypeStruct((n_pad, f_pad), jnp.float32),
        grid_spec=pltpu.PrefetchScalarGridSpec(
            num_scalar_prefetch=0,
            grid=(n_pad // tm,),
            in_specs=[
                _resident_spec((n_pad, n_pad), lambda i: (0, 0)),   # A (L1)
                _resident_spec((n_pad, f_in), lambda i: (0, 0)),    # D^-1/2 X
                _resident_spec((n_pad, 1), lambda i: (0, 0)),       # d^-1/2
                _resident_spec((f_in, f_pad), lambda i: (0, 0)),    # W1
                _resident_spec((1, f_pad), lambda i: (0, 0)),       # b1
                _resident_spec((f_pad, f_pad), lambda i: (0, 0)),   # W2
                _resident_spec((1, f_pad), lambda i: (0, 0)),       # b2
                pl.BlockSpec((tm, n_pad), lambda i: (i, 0)),        # A rows (L2)
                pl.BlockSpec((tm, 1), lambda i: (i, 0)),            # d^-1/2 rows
            ],
            out_specs=pl.BlockSpec((tm, f_pad), lambda i: (i, 0)),
        ),
        compiler_params=pltpu.CompilerParams(
            dimension_semantics=("parallel",),
            vmem_limit_bytes=vmem_limit),
    )(a, xs, dinv, w1, b1, w2, b2, a, dinv)


# ---------------------------------------------------------------------------
# Model forward: two GraphConv layers
# ---------------------------------------------------------------------------
def gcn_forward(graph, features, params):
    n, n_pad = graph["n"], graph["n_pad"]
    a_pad, dinv_pad = graph["a"], graph["dinv"]
    vmem_limit = graph["vmem_limit"]

    f_in = features.shape[1]
    f_out = params["w1"].shape[1]
    f_pad = _round_up(f_out, _LANE)     # lane-dense output / MXU columns

    # Fold the column scale d_j^-1/2 into X rows (f32), then bf16 for the MXU.
    xs = dinv_pad[:n] * features.astype(jnp.float32)
    xs_pad = _pad2(xs, (n_pad, f_in), jnp.bfloat16)

    w1 = _pad2(params["w1"], (f_in, f_pad), jnp.bfloat16)
    b1 = _pad2(params["b1"].reshape(1, -1), (1, f_pad), jnp.float32)
    w2 = _pad2(params["w2"], (f_pad, f_pad), jnp.bfloat16)
    b2 = _pad2(params["b2"].reshape(1, -1), (1, f_pad), jnp.float32)

    if graph["fused"]:
        out = _fused_forward(a_pad, xs_pad, dinv_pad, w1, b1, w2, b2,
                             n_pad=n_pad, f_pad=f_pad, vmem_limit=vmem_limit)
    else:
        tk = graph["tk"]
        tm = _choose_tm(n_pad, tk, f_pad, graph["budget"])
        # Layer 1: bf16 output, already scaled by d^-1/2 for layer 2.
        h1s = _gcn_layer_tiled(a_pad, xs_pad, dinv_pad, w1, b1,
                               n_pad=n_pad, tm=tm, tk=tk, f_pad=f_pad,
                               scale_out=True, out_dtype=jnp.bfloat16,
                               vmem_limit=vmem_limit)
        # Layer 2: f32 output.
        out = _gcn_layer_tiled(a_pad, h1s, dinv_pad, w2, b2,
                               n_pad=n_pad, tm=tm, tk=tk, f_pad=f_pad,
                               scale_out=False, out_dtype=jnp.float32,
                               vmem_limit=vmem_limit)
    return out[:n, :f_out]


# ---------------------------------------------------------------------------
# Pure-JAX reference (same math, all f32)
# ---------------------------------------------------------------------------
def normalized_adjacency(adj):
    deg = jnp.sum(adj, axis=1)
    d_inv_sqrt = jnp.where(deg > 0, 1.0 / jnp.sqrt(deg), 0.0)
    return adj * d_inv_sqrt[:, None] * d_inv_sqrt[None, :]


def _reference(adj, x, params):
    a_hat = normalized_adjacency(adj)
    h = jnp.maximum(a_hat @ x @ params["w1"] + params["b1"], 0.0)
    h = jnp.maximum(a_hat @ h @ params["w2"] + params["b2"], 0.0)
    return h


if __name__ == "__main__":
    key = jax.random.PRNGKey(0)
    k_g1, k_g2, k_w1, k_w2 = jax.random.split(key, 4)

    in_feats, n_out = 16, 32

    def glorot(k, shape):
        lim = jnp.sqrt(6.0 / (shape[0] + shape[1]))
        return jax.random.uniform(k, shape, minval=-lim, maxval=lim,
                                  dtype=jnp.float32)

    def make_graph(k, n):
        k1, k2 = jax.random.split(k)
        adj = (jax.random.uniform(k1, (n, n)) < 0.1).astype(jnp.float32)
        adj = jnp.maximum(adj, adj.T)
        adj = jnp.maximum(adj, jnp.eye(n, dtype=jnp.float32))   # self loops
        x = jax.random.normal(k2, (n, in_feats), dtype=jnp.float32)
        return adj, x

    params = {
        "w1": glorot(k_w1, (in_feats, n_out)),
        "b1": jnp.zeros((1, n_out), jnp.float32),
        "w2": glorot(k_w2, (n_out, n_out)),
        "b2": jnp.zeros((1, n_out), jnp.float32),
    }

    # Case 1: small graph -> fused two-layer path (single pallas_call).
    adj1, x1 = make_graph(k_g1, 128)
    g1 = prepare_graph(adj1)
    out1 = gcn_forward(g1, x1, params)
    jax.block_until_ready(out1)
    ref1 = _reference(adj1, x1, params)
    assert out1.shape == (128, n_out)
    assert jnp.allclose(out1, ref1, atol=2e-2, rtol=2e-2), (
        float(jnp.max(jnp.abs(out1 - ref1))))

    # Case 2: ragged n, forced K-tiled path with 2 contraction steps.
    adj2, x2 = make_graph(k_g2, 192)
    g2 = prepare_graph(adj2, force_tiled=True, max_tk=128)
    out2 = gcn_forward(g2, x2, params)
    jax.block_until_ready(out2)
    ref2 = _reference(adj2, x2, params)
    assert out2.shape == (192, n_out)
    assert jnp.allclose(out2, ref2, atol=2e-2, rtol=2e-2), (
        float(jnp.max(jnp.abs(out2 - ref2))))

    print("KERNEL_OK")
</pallas_src>

<mosaic_0001>
module attributes {stable_mosaic.version = 11 : i64} {
  func.func @_probe(%arg0: i32, %arg1: memref<8x128xf32, #tpu.memory_space<vmem>>, %arg2: memref<8x128xf32, #tpu.memory_space<vmem>>) attributes {dimension_semantics = [#tpu.dimension_semantics<arbitrary>], iteration_bounds = array<i64: 1>, scalar_prefetch = 0 : i64, scratch_operands = 0 : i64, tpu.core_type = #tpu.core_type<tc>, window_params = [{pipeline_mode = #tpu.pipeline_mode<synchronous>, transform_indices = @transform_0, window_bounds = array<i64: 8, 128>}, {pipeline_mode = #tpu.pipeline_mode<synchronous>, transform_indices = @transform_1, window_bounds = array<i64: 8, 128>}]} {
    %c0 = arith.constant 0 : index
    %c0_0 = arith.constant 0 : index
    %0 = vector.load %arg1[%c0, %c0_0] : memref<8x128xf32, #tpu.memory_space<vmem>>, vector<8x128xf32>
    %cst = arith.constant 1.000000e+00 : f32
    %1 = vector.broadcast %cst : f32 to vector<8x128xf32>
    %2 = arith.addf %0, %1 : vector<8x128xf32>
    %c0_1 = arith.constant 0 : index
    %c0_2 = arith.constant 0 : index
    %3 = vector.load %arg2[%c0_1, %c0_2] : memref<8x128xf32, #tpu.memory_space<vmem>>, vector<8x128xf32>
    tpu.vector_store %arg2[%c0_1, %c0_2], %2 {strides = array<i32>} : memref<8x128xf32, #tpu.memory_space<vmem>>, vector<8x128xf32>,
    return
  }
  func.func @transform_0(%arg0: i32) -> (i32, i32) {
    %c0_i32 = arith.constant 0 : i32
    %c0_i32_0 = arith.constant 0 : i32
    %c0_i32_1 = arith.constant 0 : i32
    return %c0_i32, %c0_i32_0 : i32, i32
  }
  func.func @transform_1(%arg0: i32) -> (i32, i32) {
    %c0_i32 = arith.constant 0 : i32
    %c0_i32_0 = arith.constant 0 : i32
    %c0_i32_1 = arith.constant 0 : i32
    return %c0_i32, %c0_i32_0 : i32, i32
  }
}

module attributes {stable_mosaic.version = 11 : i64} {
  func.func @_fused_two_layer_kernel(%arg0: i32, %arg1: memref<128x128xbf16, #tpu.memory_space<vmem>>, %arg2: memref<128x16xbf16, #tpu.memory_space<vmem>>, %arg3: memref<128x1xf32, #tpu.memory_space<vmem>>, %arg4: memref<16x128xbf16, #tpu.memory_space<vmem>>, %arg5: memref<1x128xf32, #tpu.memory_space<vmem>>, %arg6: memref<128x128xbf16, #tpu.memory_space<vmem>>, %arg7: memref<1x128xf32, #tpu.memory_space<vmem>>, %arg8: memref<64x128xbf16, #tpu.memory_space<vmem>>, %arg9: memref<64x1xf32, #tpu.memory_space<vmem>>, %arg10: memref<64x128xf32, #tpu.memory_space<vmem>>) attributes {dimension_semantics = [#tpu.dimension_semantics<parallel>], iteration_bounds = array<i64: 2>, scalar_prefetch = 0 : i64, scratch_operands = 0 : i64, tpu.core_type = #tpu.core_type<tc>, window_params = [{pipeline_mode = #tpu.pipeline_mode<synchronous>, transform_indices = @transform_0, window_bounds = array<i64: 128, 128>}, {pipeline_mode = #tpu.pipeline_mode<synchronous>, transform_indices = @transform_1, window_bounds = array<i64: 128, 16>}, {pipeline_mode = #tpu.pipeline_mode<synchronous>, transform_indices = @transform_2, window_bounds = array<i64: 128, 1>}, {pipeline_mode = #tpu.pipeline_mode<synchronous>, transform_indices = @transform_3, window_bounds = array<i64: 16, 128>}, {pipeline_mode = #tpu.pipeline_mode<synchronous>, transform_indices = @transform_4, window_bounds = array<i64: 1, 128>}, {pipeline_mode = #tpu.pipeline_mode<synchronous>, transform_indices = @transform_5, window_bounds = array<i64: 128, 128>}, {pipeline_mode = #tpu.pipeline_mode<synchronous>, transform_indices = @transform_6, window_bounds = array<i64: 1, 128>}, {transform_indices = @transform_7, window_bounds = array<i64: 64, 128>}, {transform_indices = @transform_8, window_bounds = array<i64: 64, 1>}, {transform_indices = @transform_9, window_bounds = array<i64: 64, 128>}]} {
    %c0 = arith.constant 0 : index
    %c0_0 = arith.constant 0 : index
    %0 = vector.load %arg1[%c0, %c0_0] : memref<128x128xbf16, #tpu.memory_space<vmem>>, vector<128x128xbf16>
    %c0_1 = arith.constant 0 : index
    %c0_2 = arith.constant 0 : index
    %1 = vector.load %arg2[%c0_1, %c0_2] : memref<128x16xbf16, #tpu.memory_space<vmem>>, vector<128x16xbf16>
    %cst = arith.constant dense<0.000000e+00> : vector<128x16xf32>
    %2 = tpu.matmul %0, %1, %cst {dimension_numbers = #tpu.dot_dimension_numbers<[1], [0], [0], [1], [0, 0, 1, 1], [], []>} : vector<128x128xbf16>, vector<128x16xbf16>, vector<128x16xf32> -> vector<128x16xf32>
    %c0_3 = arith.constant 0 : index
    %c0_4 = arith.constant 0 : index
    %3 = vector.load %arg3[%c0_3, %c0_4] : memref<128x1xf32, #tpu.memory_space<vmem>>, vector<128x1xf32>
    %4 = vector.broadcast %3 : vector<128x1xf32> to vector<128x16xf32>
    %5 = arith.mulf %4, %2 : vector<128x16xf32>
    %6 = arith.truncf %5 : vector<128x16xf32> to vector<128x16xbf16>
    %c0_5 = arith.constant 0 : index
    %c0_6 = arith.constant 0 : index
    %7 = vector.load %arg4[%c0_5, %c0_6] : memref<16x128xbf16, #tpu.memory_space<vmem>>, vector<16x128xbf16>
    %cst_7 = arith.constant dense<0.000000e+00> : vector<128x128xf32>
    %8 = tpu.matmul %6, %7, %cst_7 {dimension_numbers = #tpu.dot_dimension_numbers<[1], [0], [0], [1], [0, 0, 1, 1], [], []>} : vector<128x16xbf16>, vector<16x128xbf16>, vector<128x128xf32> -> vector<128x128xf32>
    %c0_8 = arith.constant 0 : index
    %c0_9 = arith.constant 0 : index
    %9 = vector.load %arg5[%c0_8, %c0_9] : memref<1x128xf32, #tpu.memory_space<vmem>>, vector<1x128xf32>
    %10 = vector.broadcast %9 : vector<1x128xf32> to vector<128x128xf32>
    %11 = arith.addf %8, %10 : vector<128x128xf32>
    %cst_10 = arith.constant 0.000000e+00 : f32
    %12 = vector.broadcast %cst_10 : f32 to vector<128x128xf32>
    %13 = arith.maximumf %11, %12 : vector<128x128xf32>
    %c0_11 = arith.constant 0 : index
    %c0_12 = arith.constant 0 : index
    %14 = vector.load %arg3[%c0_11, %c0_12] : memref<128x1xf32, #tpu.memory_space<vmem>>, vector<128x1xf32>
    %15 = vector.broadcast %14 : vector<128x1xf32> to vector<128x128xf32>
    %16 = arith.mulf %15, %13 : vector<128x128xf32>
    %17 = arith.truncf %16 : vector<128x128xf32> to vector<128x128xbf16>
    %c0_13 = arith.constant 0 : index
    %c0_14 = arith.constant 0 : index
    %18 = vector.load %arg9[%c0_13, %c0_14] : memref<64x1xf32, #tpu.memory_space<vmem>>, vector<64x1xf32>
    %c0_15 = arith.constant 0 : index
    %c0_16 = arith.constant 0 : index
    %19 = vector.load %arg8[%c0_15, %c0_16] : memref<64x128xbf16, #tpu.memory_space<vmem>>, vector<64x128xbf16>
    %cst_17 = arith.constant dense<0.000000e+00> : vector<64x128xf32>
    %20 = tpu.matmul %19, %17, %cst_17 {dimension_numbers = #tpu.dot_dimension_numbers<[1], [0], [0], [1], [0, 0, 1, 1], [], []>} : vector<64x128xbf16>, vector<128x128xbf16>, vector<64x128xf32> -> vector<64x128xf32>
    %21 = vector.broadcast %18 : vector<64x1xf32> to vector<64x128xf32>
    %22 = arith.mulf %21, %20 : vector<64x128xf32>
    %23 = arith.truncf %22 : vector<64x128xf32> to vector<64x128xbf16>
    %c0_18 = arith.constant 0 : index
    %c0_19 = arith.constant 0 : index
    %24 = vector.load %arg6[%c0_18, %c0_19] : memref<128x128xbf16, #tpu.memory_space<vmem>>, vector<128x128xbf16>
    %cst_20 = arith.constant dense<0.000000e+00> : vector<64x128xf32>
    %25 = tpu.matmul %23, %24, %cst_20 {dimension_numbers = #tpu.dot_dimension_numbers<[1], [0], [0], [1], [0, 0, 1, 1], [], []>} : vector<64x128xbf16>, vector<128x128xbf16>, vector<64x128xf32> -> vector<64x128xf32>
    %c0_21 = arith.constant 0 : index
    %c0_22 = arith.constant 0 : index
    %26 = vector.load %arg7[%c0_21, %c0_22] : memref<1x128xf32, #tpu.memory_space<vmem>>, vector<1x128xf32>
    %27 = vector.broadcast %26 : vector<1x128xf32> to vector<64x128xf32>
    %28 = arith.addf %25, %27 : vector<64x128xf32>
    %cst_23 = arith.constant 0.000000e+00 : f32
    %29 = vector.broadcast %cst_23 : f32 to vector<64x128xf32>
    %30 = arith.maximumf %28, %29 : vector<64x128xf32>
    %c0_24 = arith.constant 0 : index
    %c0_25 = arith.constant 0 : index
    %31 = vector.load %arg10[%c0_24, %c0_25] : memref<64x128xf32, #tpu.memory_space<vmem>>, vector<64x128xf32>
    tpu.vector_store %arg10[%c0_24, %c0_25], %30 {strides = array<i32>} : memref<64x128xf32, #tpu.memory_space<vmem>>, vector<64x128xf32>,
    return
  }
  func.func @transform_0(%arg0: i32) -> (i32, i32) {
    %c0_i32 = arith.constant 0 : i32
    %c0_i32_0 = arith.constant 0 : i32
    %c0_i32_1 = arith.constant 0 : i32
    return %c0_i32, %c0_i32_0 : i32, i32
  }
  func.func @transform_1(%arg0: i32) -> (i32, i32) {
    %c0_i32 = arith.constant 0 : i32
    %c0_i32_0 = arith.constant 0 : i32
    %c0_i32_1 = arith.constant 0 : i32
    return %c0_i32, %c0_i32_0 : i32, i32
  }
  func.func @transform_2(%arg0: i32) -> (i32, i32) {
    %c0_i32 = arith.constant 0 : i32
    %c0_i32_0 = arith.constant 0 : i32
    %c0_i32_1 = arith.constant 0 : i32
    return %c0_i32, %c0_i32_0 : i32, i32
  }
  func.func @transform_3(%arg0: i32) -> (i32, i32) {
    %c0_i32 = arith.constant 0 : i32
    %c0_i32_0 = arith.constant 0 : i32
    %c0_i32_1 = arith.constant 0 : i32
    return %c0_i32, %c0_i32_0 : i32, i32
  }
  func.func @transform_4(%arg0: i32) -> (i32, i32) {
    %c0_i32 = arith.constant 0 : i32
    %c0_i32_0 = arith.constant 0 : i32
    %c0_i32_1 = arith.constant 0 : i32
    return %c0_i32, %c0_i32_0 : i32, i32
  }
  func.func @transform_5(%arg0: i32) -> (i32, i32) {
    %c0_i32 = arith.constant 0 : i32
    %c0_i32_0 = arith.constant 0 : i32
    %c0_i32_1 = arith.constant 0 : i32
    return %c0_i32, %c0_i32_0 : i32, i32
  }
  func.func @transform_6(%arg0: i32) -> (i32, i32) {
    %c0_i32 = arith.constant 0 : i32
    %c0_i32_0 = arith.constant 0 : i32
    %c0_i32_1 = arith.constant 0 : i32
    return %c0_i32, %c0_i32_0 : i32, i32
  }
  func.func @transform_7(%arg0: i32) -> (i32, i32) {
    %c0_i32 = arith.constant 0 : i32
    %c0_i32_0 = arith.constant 0 : i32
    return %arg0, %c0_i32 : i32, i32
  }
  func.func @transform_8(%arg0: i32) -> (i32, i32) {
    %c0_i32 = arith.constant 0 : i32
    %c0_i32_0 = arith.constant 0 : i32
    return %arg0, %c0_i32 : i32, i32
  }
  func.func @transform_9(%arg0: i32) -> (i32, i32) {
    %c0_i32 = arith.constant 0 : i32
    %c0_i32_0 = arith.constant 0 : i32
    return %arg0, %c0_i32 : i32, i32
  }
}

</mosaic_0001>

<bundles_post_ra>
// kernel: tpu_custom_call.1
= control target key start
LH: loop header
LB: loop body
LE: loop exit
PB: predicated region body
PF: predicated region fallthrough
CT: control target
= control target key end

     0   :  { %6 = vsyncpa [#allocation3], 0  ;;  %s115_s0 = inlined_call_operand.hbm [shape: f32[8,128], index: 0, kind: input, shape index: {}]   ;;  %s116_s1 = inlined_call_operand.hbm [shape: f32[8,128], index: 1, kind: output, shape index: {}]  }
   0x1   :  { %7 = vsyncpa [#allocation4], 0  ;;  %s13_s8 = sshll.u32 %s115_s0, 4  ;;  %s97_s9 = smov [#allocation2]   ;;  %s14_s8 = int_to_ptr.hbm [resolvable:$true] %s13_s8 }
   0x2   :  { %s15_s10 = sshll.u32 %s97_s9, 4  ;;  %s16_s10 = int_to_ptr.vmem [resolvable:$true] %s15_s10 }
   0x3   :  { %18 = dma.hbm_to_vmem [thread:$0]  %s14_s8, 128, %s16_s10, [#allocation3]  }
   0x4   :  { %93 = dma.done.wait [#allocation3], 128  }
   0x5   :  { %94 = vsyncadd [#allocation3], 4294967168  ;;  %s98_s11 = smov [#allocation5]   ;;  %s33_s15 = sshll.u32 %s116_s1, 4  ;;  %v23_v0 = vld [vmem:[#allocation2] sm:$0xff]  ;;  %s34_s15 = int_to_ptr.hbm [resolvable:$true] %s33_s15 }
   0x6   :  { %s31_s12 = sshll.u32 %s98_s11, 4  ;;  %v24_v1 = vadd.f32 1.0, %v23_v0  ;;  %s32_s12 = int_to_ptr.vmem [resolvable:$true] %s31_s12 }
   0x8   :  { %25 = vst [vmem:[#allocation5] sm:$0xff] %v24_v1 }
   0x9   :  { %36 = dma.vmem_to_hbm [thread:$0]  %s32_s12, 128, %s34_s15, [#allocation4]  }
   0xa   :  { %95 = dma.done.wait [#allocation4], 128  }
   0xb   :  { %96 = vsyncadd [#allocation4], 4294967168 }
   0xc   :  { %41 = vsyncpa [#allocation3], 1 }
   0xd   :  { %42 = vsyncpa [#allocation4], 1 }

// kernel: tpu_custom_call.1
= control target key start
LH: loop header
LB: loop body
LE: loop exit
PB: predicated region body
PF: predicated region fallthrough
CT: control target
= control target key end

     0   :  { %s1758_s0 = inlined_call_operand.vmem [shape: bf16[128,128], index: 0, kind: input, shape index: {}]   ;;  %s1759_s1 = inlined_call_operand.vmem [shape: bf16[128,16], index: 1, kind: input, shape index: {}]   ;;  %s1760_s2 = inlined_call_operand.vmem [shape: f32[128,1], index: 2, kind: input, shape index: {}]   ;;  %s1761_s3 = inlined_call_operand.vmem [shape: bf16[16,128], index: 3, kind: input, shape index: {}]   ;;  %s1762_s4 = inlined_call_operand.vmem [shape: f32[1,128], index: 4, kind: input, shape index: {}]   ;;  %s1763_s5 = inlined_call_operand.vmem [shape: bf16[128,128], index: 5, kind: input, shape index: {}]   ;;  %s1764_s6 = inlined_call_operand.vmem [shape: f32[1,128], index: 6, kind: input, shape index: {}]   ;;  %s1765_s7 = inlined_call_operand.vmem [shape: bf16[128,128], index: 7, kind: input, shape index: {}]   ;;  %s1766_s8 = inlined_call_operand.vmem [shape: f32[128,1], index: 8, kind: input, shape index: {}]   ;;  %s1767_s9 = inlined_call_operand.hbm [shape: f32[128,128], index: 9, kind: output, shape index: {}]  }
   0x1   :  { %1768 = sst [smem:[#allocation5_spill]] %s1759_s1 }
   0x2   :  { %14 = vsyncpa [#allocation3], 0 }
   0x3   :  { %16 = vsyncpa [#allocation3 + $0x1], 0  ;;  %s1444_s30 = smov 0   ;;  %s1446_s10 = smov 0  }
   0x4   :  { %s1448_s11 = smov 0   ;;  %s1450_s12 = smov 0  }
   0x5 LB: > { %s1465_s13 = sadd.s32 4294967295, %s1389_s12   ;;  %s1104_s14 = sadd.s32 4294967294, %s1389_s12   ;;  %s1389_s12 = sphi %s1450_s12, %s1775_s12   ;;  %s1385_s11 = sphi %s1448_s11, %s1774_s11   ;;  %s1381_s10 = sphi %s1446_s10, %s1773_s10   ;;  %s1377_s30 = sphi %s1444_s30, %s1772_s30  }
   0x6   : > { %s1469_s15 = sadd.s32 1, %s1389_s12   ;;  %s228_s16 = sadd.s32 1, %s1385_s11 }
   0x7   : > { %s225_s17 = ssub.s32 %s1389_s12, %s1469_s15  ;;  %p238_p0 = scmp.ne.s32.totalorder %s1385_s11, %s1381_s10 }
   0x8   : > { %p226_p1 = scmp.eq.s32.totalorder %s225_s17, 0  ;;  %p239_p2 = scmp.eq.s32.totalorder %s1465_s13, 1 }
   0x9   : > { %p244_p3 = scmp.ne.s32.totalorder %s1381_s10, %s1377_s30  ;;  %p245_p4 = scmp.eq.s32.totalorder %s1104_s14, 1 }
   0xa   : > { %s1480_s18 = scalar_select %p226_p1, %s1385_s11, %s228_s16  }
   0xb   : > { %p1482_p5 = por %p239_p2, %p238_p0  ;;  %p1486_p6 = por %p245_p4, %p244_p3 }
   0xc   : > { %p1107_p7 = scmp.ge.s32.totalorder %s1389_s12, 1  ;;  %p302_p8 = scmp.lt.s32.totalorder %s1389_s12, 3 }
   0xe   : > { %p303_p9 = pnand %p1107_p7, %p302_p8 }
   0xf   : > { %s1771_s1 = sld [smem:[#allocation5_spill]] (!%p303_p9)  ;;  %s1109_s29 = sshll.u32 (!%p303_p9), %s1465_s13, 3 }
  0x10   : > { %306 = sbr.rel (%p303_p9) target bundleno = 817 (0x331), region = 56  ;;  %p344_p10 = scmp.lt.s32.totalorder (!%p303_p9), %s1109_s29, 15 }
  0x11   : > { %s1271_s22 = sshll.u32 (!%p303_p9), %s1465_s13, 6 }
  0x15   : > { %v534_v0 = vld [vmem:[%s1760_s2] sm:$0xff]  ;;  %v1257_v1 = vld [vmem:[%s1771_s1 + $0x38] sm:$0xff]  ;;  %v536_v2 = vld [vmem:[%s1760_s2 + $0x10] sm:$0xff]  ;;  %v1391_v3 = vmov 0   ;;  %s1777_s29 = smov (!%p344_p10, %s1109_s29), 15  ;;  %vm666_vm0 = vcmask 130048  }
  0x16   : > { %1322 = vset.pattern.permute.xlu0 %v1391_v3  ;;  %1323 = vset.pattern.permute.xlu1 %v1391_v3  ;;  %v1256_v4 = vld [vmem:[%s1771_s1 + $0x30] sm:$0xff]  ;;  %v1255_v5 = vld [vmem:[%s1771_s1 + $0x28] sm:$0xff]  ;;  %v537_v7 = vld [vmem:[%s1760_s2 + $0x18] sm:$0xff]  ;;  %s1112_s23 = sshll.u32 %s1777_s29, 3 }
  0x17   : > { %552 = vperm.xlu0 %1322, %v534_v0   ;;  %485 = vmatpush.bf16.msra.mxu0 %v1257_v1  ;;  %v535_v6 = vld [vmem:[%s1760_s2 + $0x8] sm:$0xff]  ;;  %v1254_v8 = vld [vmem:[%s1771_s1 + $0x20] sm:$0xff]  ;;  %v1253_v10 = vld [vmem:[%s1771_s1 + $0x18] sm:$0xff]  ;;  %s353_s26 = scalar_lea.vmem %s1766_s8, %s1112_s23  ;;  %s1110_s23 = sshll.u32 %s1777_s29, 2 }
  0x18   : > { %1272 = vmatpush.bf16.msra.mxu2 %v1257_v1  ;;  %562 = vperm.xlu1 %1323, %v536_v2   ;;  %v538_v9 = vld [vmem:[%s1760_s2 + $0x20] sm:$0xff]  ;;  %v540_v11 = vld [vmem:[%s1760_s2 + $0x30] sm:$0xff]  ;;  %v541_v12 = vld [vmem:[%s1760_s2 + $0x38] sm:$0xff]  ;;  %s347_s25 = scalar_lea.vmem %s1765_s7, %s1110_s23 }
  0x19   : > { %1324 = vset.pattern.permute.xlu2 %v1391_v3  ;;  %v1252_v13 = vld [vmem:[%s1771_s1 + $0x10] sm:$0xff]  ;;  %v539_v14 = vld [vmem:[%s1760_s2 + $0x28] sm:$0xff]  ;;  %v1250_v18 = vld [vmem:[%s1771_s1] sm:$0xff] }
  0x1a   : > { %572 = vperm.xlu2 %1324, %v538_v9   ;;  %v1251_v15 = vld [vmem:[%s1771_s1 + $0x8] sm:$0xff]  ;;  %v544_v17 = vld [vmem:[%s1760_s2 + $0x50] sm:$0xff]  ;;  %v542_v19 = vld [vmem:[%s1760_s2 + $0x40] sm:$0xff]  ;;  %s1026_s1 = scalar_lea.hbm %s1767_s9, %s1271_s22 }
  0x1b   : > { %486 = vmatpush.bf16.msra.mxu0 %v1256_v4  ;;  %v543_v16 = vld [vmem:[%s1760_s2 + $0x48] sm:$0xff]  ;;  %v1242_v20 = vld [vmem:[%s1758_s0] sm:$0xff]  ;;  %v1248_v21 = vld [vmem:[%s1758_s0 + $0x30] sm:$0xff]  ;;  %s1029_s28 = sshll.u32 %s1026_s1, 4  ;;  %s1030_s28 = int_to_ptr.hbm [resolvable:$true] %s1029_s28 }
  0x1c   : > { %1273 = vmatpush.bf16.msra.mxu2 %v1256_v4  ;;  %v546_v22 = vld [vmem:[%s1760_s2 + $0x60] sm:$0xff]  ;;  %v547_v23 = vld [vmem:[%s1760_s2 + $0x68] sm:$0xff]  ;;  %v545_v24 = vld [vmem:[%s1760_s2 + $0x58] sm:$0xff]  ;;  %s1341_s29 = sshra.s32 %s1030_s28, 4  ;;  %s1342_s29 = int_to_ptr.hbm [resolvable:$true] %s1341_s29 }
  0x1d   : > { %v549_v25 = vld [vmem:[%s1760_s2 + $0x78] sm:$0xff]  ;;  %v780_v26 = vld [vmem:[%s353_s26] sm:$0xff]  ;;  %v548_v27 = vld [vmem:[%s1760_s2 + $0x70] sm:$0xff]  ;;  %s1343_s13 = scalar_lea.hbm %s1342_s29, 64  ;;  %p1348_p0 = scmp.lt.s32.totalorder %s1342_s29, %s1767_s9 }
  0x1e   : > { %v1243_v28 = vld [vmem:[%s1758_s0 + $0x8] sm:$0xff]  ;;  %v1249_v29 = vld [vmem:[%s1758_s0 + $0x38] sm:$0xff]  ;;  %v782_v30 = vld [vmem:[%s353_s26 + $0x10] sm:$0xff]  ;;  %p1344_p11 = scmp.ne.s32.totalorder %s1342_s29, %s1343_s13 }
  0x1f   : > { %557 = vperm.xlu0 %1322, %v535_v6   ;;  %487 = vmatpush.bf16.msra.mxu0 %v1255_v5  ;;  %v783_v31 = vld [vmem:[%s353_s26 + $0x18] sm:$0xff]  ;;  %v781_v32 = vld [vmem:[%s353_s26 + $0x8] sm:$0xff]  ;;  %v786_v34 = vld [vmem:[%s353_s26 + $0x30] sm:$0xff] }
  0x20   : > { %1274 = vmatpush.bf16.msra.mxu2 %v1255_v5  ;;  %567 = vperm.xlu1 %1323, %v537_v7   ;;  %v785_v33 = vld [vmem:[%s353_s26 + $0x28] sm:$0xff]  ;;  %v784_v35 = vld [vmem:[%s353_s26 + $0x20] sm:$0xff]  ;;  %v1244_v36 = vld [vmem:[%s1758_s0 + $0x10] sm:$0xff]  ;;  %p1345_p12 = pnand %p1344_p11, %p1482_p5 }
  0x21   : > { %v787_v37 = vld [vmem:[%s353_s26 + $0x38] sm:$0xff]  ;;  %v1246_v39 = vld [vmem:[%s1758_s0 + $0x20] sm:$0xff]  ;;  %v1247_v40 = vld [vmem:[%s1758_s0 + $0x28] sm:$0xff] }
  0x22   : > { %577 = vperm.xlu2 %1324, %v539_v14   ;;  %v1245_v38 = vld [vmem:[%s1758_s0 + $0x18] sm:$0xff]  ;;  %v1258_v41 = vld [vmem:[%s1761_s3] sm:$0xff]  ;;  %p1346_p13 = pneg %p1345_p12 }
  0x23   : > { %488 = vmatpush.bf16.msra.mxu0 %v1254_v8  ;;  %698 = vmatpush.bf16.msra.mxu1 %v1258_v41 }
  0x24   : > { %1275 = vmatpush.bf16.msra.mxu2 %v1254_v8 }
  0x27   : > { %582 = vperm.xlu0 %1322, %v540_v11   ;;  %489 = vmatpush.bf16.msra.mxu0 %v1253_v10 }
  0x28   : > { %1276 = vmatpush.bf16.msra.mxu2 %v1253_v10  ;;  %587 = vperm.xlu1 %1323, %v541_v12  }
  0x2a   : > { %592 = vperm.xlu2 %1324, %v542_v19  }
  0x2b   : > { %490 = vmatpush.bf16.msra.mxu0 %v1252_v13 }
  0x2c   : > { %1277 = vmatpush.bf16.msra.mxu2 %v1252_v13 }
  0x2f   : > { %597 = vperm.xlu0 %1322, %v543_v16   ;;  %491 = vmatpush.bf16.msra.mxu0 %v1251_v15 }
  0x30   : > { %1278 = vmatpush.bf16.msra.mxu2 %v1251_v15  ;;  %602 = vperm.xlu1 %1323, %v544_v17  }
  0x32   : > { %607 = vperm.xlu2 %1324, %v545_v24  }
  0x33   : > { %492 = vmatpush.bf16.msra.mxu0 %v1250_v18 }
  0x34   : > { %1279 = vmatpush.bf16.msra.mxu2 %v1250_v18 }
  0x36   : > { %493 = vmatmul.bf16.vlgmr.msra.gmra.mxu0 %v1242_v20 }
  0x37   : > { %612 = vperm.xlu0 %1322, %v546_v22   ;;  %523 = vmatmul.bf16.vlgmr.msra.gmra.mxu2 %v1248_v21 }
  0x38   : > { %617 = vperm.xlu1 %1323, %v547_v23  }
  0x3a   : > { %622 = vperm.xlu2 %1324, %v548_v27  }
  0x3f   : > { %627 = vperm.xlu0 %1322, %v549_v25  }
  0x40   : > { %851 = vperm.xlu1 %1323, %v780_v26  }
  0x42   : > { %856 = vperm.xlu2 %1324, %v781_v32  }
  0x46   : > { %498 = vmatmul.bf16.gmra.mxu0 %v1243_v28 }
  0x47   : > { %528 = vmatmul.bf16.gmra.mxu2 %v1249_v29  ;;  %861 = vperm.xlu0 %1322, %v782_v30  }
  0x48   : > { %866 = vperm.xlu1 %1323, %v783_v31  }
  0x4a   : > { %871 = vperm.xlu2 %1324, %v784_v35   ;;  %v1325_v35 = vld [vmem:[%s1762_s4] ss:$0 sm:$0xff] }
  0x4f   : > { %876 = vperm.xlu0 %1322, %v785_v33  }
  0x50   : > { %881 = vperm.xlu1 %1323, %v786_v34  }
  0x52   : > { %886 = vperm.xlu2 %1324, %v787_v37  }
  0x56   : > { %503 = vmatmul.bf16.gmra.mxu0 %v1244_v36 }
  0x66   : > { %508 = vmatmul.bf16.gmra.mxu0 %v1245_v38 }
  0x74   : > { %v1612_v56 = vpop.permute.xlu2 %572 }
  0x76   : > { %513 = vmatmul.bf16.gmra.mxu0 %v1246_v39 }
  0x7c   : > { %v1614_v58 = vpop.permute.xlu2 %577 }
  0x84   : > { %v1626_v7 = vpop.permute.xlu2 %592 }
  0x86   : > { %518 = vmatmul.bf16.gmra.mxu0 %v1247_v40 }
  0x89   : > { %v1598_v42 = vpop.permute.xlu0 %552 }
  0x8a   : > { %v1605_v49 = vpop.permute.xlu1 %562 }
  0x8c   : > { %v1633_v15 = vpop.permute.xlu2 %607 }
  0x91   : > { %v1600_v44 = vpop.permute.xlu0 %557 }
  0x92   : > { %v1607_v51 = vpop.permute.xlu1 %567 }
  0x94   : > { %v623_v30 = vpop.permute.xlu2 %622 }
  0x99   : > { %v1619_v0 = vpop.permute.xlu0 %582 }
  0x9a   : > { %v1621_v1 = vpop.permute.xlu1 %587 }
  0xa1   : > { %v1628_v8 = vpop.permute.xlu0 %597 }
  0xa2   : > { %v1635_v16 = vpop.permute.xlu1 %602 }
  0xa9   : > { %v1643_v24 = vpop.permute.xlu0 %612 }
  0xaa   : > { %v1640_v22 = vpop.permute.xlu1 %617 }
  0xb1   : > { %v628_v29 = vpop.permute.xlu0 %627 }
  0xb3   : > { %v494_v43 = vpop.f32.mrf.mxu0 }
  0xb4   : > { %v630_v46 = vmul.f32 %v1598_v42, %v494_v43 }
  0xba   : > { %v524_v14 = vpop.f32.mrf.mxu2 }
  0xbb   : > { %v496_v45 = vpop.f32.mrf.mxu0  ;;  %v642_v25 = vmul.f32 %v1643_v24, %v524_v14 }
  0xbc   : > { %v631_v47 = vmul.f32 %v1600_v44, %v496_v45 }
  0xbe   : > { %v646_v48 = vpack.c.bf16 %v631_v47, %v630_v46 }
  0xc0   : > { %1181 = vmatmul.msk.bf16.vlgmr.msra.gmra.mxu1 %vm666_vm0, %v646_v48 }
  0xc2   : > { %v526_v21 = vpop.f32.mrf.mxu2 }
  0xc3   : > { %v499_v50 = vpop.f32.mrf.mxu0  ;;  %v643_v23 = vmul.f32 %v1640_v22, %v526_v21 }
  0xc4   : > { %v632_v53 = vmul.f32 %v1605_v49, %v499_v50 }
  0xc5   : > { %v652_v27 = vpack.c.bf16 %v643_v23, %v642_v25 }
  0xca   : > { %v529_v26 = vpop.f32.mrf.mxu2 }
  0xcb   : > { %v501_v52 = vpop.f32.mrf.mxu0  ;;  %v644_v31 = vmul.f32 %v623_v30, %v529_v26 }
  0xcc   : > { %v633_v54 = vmul.f32 %v1607_v51, %v501_v52 }
  0xce   : > { %v647_v55 = vpack.c.bf16 %v633_v54, %v632_v53 }
  0xd0   : > { %1182 = vmatmul.msk.bf16.gmra.mxu1 %vm666_vm0, %v647_v55 }
  0xd2   : > { %v531_v28 = vpop.f32.mrf.mxu2 }
  0xd3   : > { %v504_v57 = vpop.f32.mrf.mxu0  ;;  %v645_v32 = vmul.f32 %v628_v29, %v531_v28 }
  0xd4   : > { %v634_v60 = vmul.f32 %v1612_v56, %v504_v57 }
  0xd5   : > { %v653_v33 = vpack.c.bf16 %v645_v32, %v644_v31 }
  0xdb   : > { %v506_v59 = vpop.f32.mrf.mxu0 }
  0xdc   : > { %v635_v61 = vmul.f32 %v1614_v58, %v506_v59 }
  0xde   : > { %v648_v62 = vpack.c.bf16 %v635_v61, %v634_v60 }
  0xe0   : > { %1183 = vmatmul.msk.bf16.gmra.mxu1 %vm666_vm0, %v648_v62 }
  0xe3   : > { %v509_v63 = vpop.f32.mrf.mxu0 }
  0xe4   : > { %v636_v3 = vmul.f32 %v1619_v0, %v509_v63 }
  0xeb   : > { %v511_v2 = vpop.f32.mrf.mxu0 }
  0xec   : > { %v637_v4 = vmul.f32 %v1621_v1, %v511_v2 }
  0xee   : > { %v649_v5 = vpack.c.bf16 %v637_v4, %v636_v3 }
  0xf0   : > { %1184 = vmatmul.msk.bf16.gmra.mxu1 %vm666_vm0, %v649_v5 }
  0xf3   : > { %v514_v6 = vpop.f32.mrf.mxu0 }
  0xf4   : > { %v638_v10 = vmul.f32 %v1626_v7, %v514_v6 }
  0xfb   : > { %v516_v9 = vpop.f32.mrf.mxu0 }
  0xfc   : > { %v639_v11 = vmul.f32 %v1628_v8, %v516_v9 }
  0xfe   : > { %v650_v12 = vpack.c.bf16 %v639_v11, %v638_v10 }
 0x100   : > { %1185 = vmatmul.msk.bf16.gmra.mxu1 %vm666_vm0, %v650_v12 }
 0x103   : > { %v519_v13 = vpop.f32.mrf.mxu0 }
 0x104   : > { %v640_v18 = vmul.f32 %v1635_v16, %v519_v13 }
 0x10b   : > { %v521_v17 = vpop.f32.mrf.mxu0 }
 0x10c   : > { %v641_v19 = vmul.f32 %v1633_v15, %v521_v17 }
 0x10e   : > { %v651_v20 = vpack.c.bf16 %v641_v19, %v640_v18 }
 0x110   : > { %1186 = vmatmul.msk.bf16.gmra.mxu1 %vm666_vm0, %v651_v20 }
 0x120   : > { %1187 = vmatmul.msk.bf16.gmra.mxu1 %vm666_vm0, %v652_v27 }
 0x130   : > { %1188 = vmatmul.msk.bf16.gmra.mxu1 %vm666_vm0, %v653_v33 }
 0x13d   : > { %v700_v34 = vpop.f32.mrf.mxu1 }
 0x13e   : > { %v701_v36 = vadd.f32 %v1325_v35, %v700_v34 }
 0x140   : > { %v740_v38 = vmax.f32 %v701_v36, 0.0 }
 0x142   : > { %v1652_v41 = vmul.f32 %v740_v38, %v1598_v42 }
 0x145   : > { %v702_v37 = vpop.f32.mrf.mxu1 }
 0x146   : > { %v703_v39 = vadd.f32 %v1325_v35, %v702_v37 }
 0x148   : > { %v741_v40 = vmax.f32 %v703_v39, 0.0 }
 0x14a   : > { %v1655_v43 = vmul.f32 %v741_v40, %v1600_v44 }
 0x14c   : > { %v772_v45 = vpack.c.bf16 %v1655_v43, %v1652_v41  ;;  %v1267_v41 = vld [vmem:[%s1763_s5 + $0x20] sm:$0xff]  ;;  %v1261_v43 = vld [vmem:[%s347_s25 + $0x10] sm:$0xff] }
 0x14d   : > { %v705_v46 = vpop.f32.mrf.mxu1 }
 0x14e   : > { %v706_v47 = vadd.f32 %v1325_v35, %v705_v46 }
 0x150   : > { %v742_v50 = vmax.f32 %v706_v47, 0.0 }
 0x152   : > { %v1660_v54 = vmul.f32 %v742_v50, %v1605_v49 }
 0x155   : > { %v707_v48 = vpop.f32.mrf.mxu1 }
 0x156   : > { %v708_v52 = vadd.f32 %v1325_v35, %v707_v48 }
 0x158   : > { %v743_v53 = vmax.f32 %v708_v52, 0.0 }
 0x15a   : > { %v1663_v55 = vmul.f32 %v743_v53, %v1607_v51 }
 0x15c   : > { %v773_v42 = vpack.c.bf16 %v1663_v55, %v1660_v54  ;;  %v1262_v55 = vld [vmem:[%s347_s25 + $0x18] sm:$0xff] }
 0x15d   : > { %v710_v44 = vpop.f32.mrf.mxu1 }
 0x15e   : > { %v711_v57 = vadd.f32 %v1325_v35, %v710_v44  ;;  %v1264_v44 = vld [vmem:[%s1763_s5 + $0x8] sm:$0xff] }
 0x160   : > { %v744_v60 = vmax.f32 %v711_v57, 0.0  ;;  %v1263_v57 = vld [vmem:[%s1763_s5] sm:$0xff] }
 0x162   : > { %v760_v63 = vmul.f32 %v744_v60, %v1612_v56  ;;  %v857_v60 = vpop.permute.xlu2 %856 }
 0x165   : > { %v712_v59 = vpop.f32.mrf.mxu1 }
 0x166   : > { %v713_v61 = vadd.f32 %v1325_v35, %v712_v59 }
 0x168   : > { %v745_v62 = vmax.f32 %v713_v61, 0.0  ;;  %v852_v61 = vpop.permute.xlu1 %851 }
 0x16a   : > { %v761_v2 = vmul.f32 %v745_v62, %v1614_v58 }
 0x16c   : > { %v774_v3 = vpack.c.bf16 %v761_v2, %v760_v63 }
 0x16d   : > { %v715_v4 = vpop.f32.mrf.mxu1 }
 0x16e   : > { %v716_v49 = vadd.f32 %v1325_v35, %v715_v4 }
 0x170   : > { %v746_v6 = vmax.f32 %v716_v49, 0.0  ;;  %v862_v49 = vpop.permute.xlu0 %861 }
 0x172   : > { %v762_v10 = vmul.f32 %v746_v6, %v1619_v0 }
 0x175   : > { %v717_v5 = vpop.f32.mrf.mxu1 }
 0x176   : > { %v718_v51 = vadd.f32 %v1325_v35, %v717_v5  ;;  %v867_v5 = vpop.permute.xlu1 %866 }
 0x178   : > { %v747_v9 = vmax.f32 %v718_v51, 0.0 }
 0x17a   : > { %v763_v11 = vmul.f32 %v747_v9, %v1621_v1 }
 0x17c   : > { %v775_v12 = vpack.c.bf16 %v763_v11, %v762_v10 }
 0x17d   : > { %v720_v13 = vpop.f32.mrf.mxu1 }
 0x17e   : > { %v721_v40 = vadd.f32 %v1325_v35, %v720_v13  ;;  %v877_v13 = vpop.permute.xlu0 %876 }
 0x180   : > { %v748_v53 = vmax.f32 %v721_v40, 0.0 }
 0x185   : > { %v722_v14 = vpop.f32.mrf.mxu1 }
 0x186   : > { %v723_v36 = vadd.f32 %v1325_v35, %v722_v14 }
 0x188   : > { %v749_v48 = vmax.f32 %v723_v36, 0.0 }
 0x18d   : > { %v725_v17 = vpop.f32.mrf.mxu1 }
 0x18e   : > { %v726_v0 = vadd.f32 %v1325_v35, %v725_v17 }
 0x190   : > { %v750_v46 = vmax.f32 %v726_v0, 0.0 }
 0x192   : > { %v766_v54 = vmul.f32 %v750_v46, %v1635_v16  ;;  %v1269_v16 = vld [vmem:[%s1763_s5 + $0x30] sm:$0xff] }
 0x195   : > { %v727_v18 = vpop.f32.mrf.mxu1 }
 0x196   : > { %v728_v28 = vadd.f32 %v1325_v35, %v727_v18 }
 0x198   : > { %v751_v37 = vmax.f32 %v728_v28, 0.0 }
 0x19a   : > { %v767_v50 = vmul.f32 %v751_v37, %v1633_v15  ;;  %v1259_v15 = vld [vmem:[%s347_s25] sm:$0xff] }
 0x19d   : > { %v730_v19 = vpop.f32.mrf.mxu1 }
 0x19e   : > { %v731_v25 = vadd.f32 %v1325_v35, %v730_v19 }
 0x1a0   : > { %v752_v33 = vmax.f32 %v731_v25, 0.0 }
 0x1a2   : > { %v768_v47 = vmul.f32 %v752_v33, %v1643_v24  ;;  %v1268_v24 = vld [vmem:[%s1763_s5 + $0x28] sm:$0xff] }
 0x1a5   : > { %v732_v56 = vpop.f32.mrf.mxu1 }
 0x1a6   : > { %v733_v21 = vadd.f32 %v1325_v35, %v732_v56 }
 0x1a8   : > { %v753_v31 = vmax.f32 %v733_v21, 0.0 }
 0x1aa   : > { %v769_v38 = vmul.f32 %v753_v31, %v1640_v22  ;;  %v764_v22 = vmul.f32 %v748_v53, %v1626_v7  ;;  %v1270_v7 = vld [vmem:[%s1763_s5 + $0x38] sm:$0xff] }
 0x1ab   : > { %969 = vmatpush.bf16.msra.mxu3 %v1270_v7 }
 0x1ac   : > { %v778_v52 = vpack.c.bf16 %v769_v38, %v768_v47 }
 0x1ad   : > { %v735_v20 = vpop.f32.mrf.mxu1 }
 0x1ae   : > { %v736_v58 = vadd.f32 %v1325_v35, %v735_v20 }
 0x1af   : > { %970 = vmatpush.bf16.msra.mxu3 %v1269_v16 }
 0x1b0   : > { %v754_v26 = vmax.f32 %v736_v58, 0.0  ;;  %v882_v58 = vpop.permute.xlu1 %881 }
 0x1b2   : > { %v770_v1 = vmul.f32 %v754_v26, %v623_v30  ;;  %v777_v30 = vpack.c.bf16 %v767_v50, %v766_v54 }
 0x1b3   : > { %971 = vmatpush.bf16.msra.mxu3 %v1268_v24 }
 0x1b5   : > { %v737_v23 = vpop.f32.mrf.mxu1 }
 0x1b6   : > { %v738_v27 = vadd.f32 %v1325_v35, %v737_v23 }
 0x1b7   : > { %972 = vmatpush.bf16.msra.mxu3 %v1267_v41 }
 0x1b8   : > { %v755_v32 = vmax.f32 %v738_v27, 0.0  ;;  %v1326_v27 = vld [vmem:[%s1764_s6] ss:$0 sm:$0xff] }
 0x1ba   : > { %v771_v34 = vmul.f32 %v755_v32, %v628_v29  ;;  %v765_v29 = vmul.f32 %v749_v48, %v1628_v8  ;;  %v1260_v8 = vld [vmem:[%s347_s25 + $0x8] sm:$0xff]  ;;  %s340_s25 = sand.u32 1, %s1381_s10  }
 0x1bb   : > { %s1108_s21 = sshll.u32 %s340_s25, 6  ;;  %s1015_s14 = scalar_lea.sflag [#allocation3], %s340_s25 }
 0x1bc   : > { %v779_v39 = vpack.c.bf16 %v771_v34, %v770_v1  ;;  %v776_v35 = vpack.c.bf16 %v765_v29, %v764_v22  ;;  %s1714_s26 = scalar_lea.vmem [#allocation2], %s1108_s21  ;;  %s1347_s21 = scalar_lea.hbm %s1767_s9, 128 }
 0x1bd   : > { %s1027_s27 = sshll.u32 %s1714_s26, 4  ;;  %p1349_p1 = scmp.lt.s32.totalorder %s1347_s21, %s1343_s13  ;;  %s1028_s27 = int_to_ptr.vmem [resolvable:$true] %s1027_s27 }
 0x1be   : > { %820 = vmatpush.bf16.msrb.mxu2 %v779_v39 }
 0x1bf   : > { %p1350_p2 = por %p1349_p1, %p1348_p0 }
 0x1c1   : > { %p1351_p3 = pnand %p1350_p2, %p1346_p13 }
 0x1c2   : > { %821 = vmatpush.bf16.msrb.mxu2 %v778_v52 }
 0x1c6   : > { %822 = vmatpush.bf16.msrb.mxu2 %v777_v30 }
 0x1ca   : > { %823 = vmatpush.bf16.msrb.mxu2 %v776_v35 }
 0x1ce   : > { %824 = vmatpush.bf16.msrb.mxu2 %v775_v12  ;;  %v872_v12 = vpop.permute.xlu2 %871 }
 0x1d2   : > { %825 = vmatpush.bf16.msrb.mxu2 %v774_v3 }
 0x1d6   : > { %826 = vmatpush.bf16.msrb.mxu2 %v773_v42  ;;  %v1265_v42 = vld [vmem:[%s1763_s5 + $0x10] sm:$0xff]  ;;  %v887_v20 = vpop.permute.xlu2 %886 }
 0x1da   : > { %827 = vmatpush.bf16.msrb.mxu2 %v772_v45  ;;  %v1266_v45 = vld [vmem:[%s1763_s5 + $0x18] sm:$0xff] }
 0x1db   : > { %973 = vmatpush.bf16.msra.mxu3 %v1266_v45 }
 0x1dd   : > { %828 = vmatmul.bf16.vlgmr.msrb.gmra.mxu2 %v1259_v15 }
 0x1df   : > { %974 = vmatpush.bf16.msra.mxu3 %v1265_v42 }
 0x1e3   : > { %975 = vmatpush.bf16.msra.mxu3 %v1264_v44 }
 0x1e7   : > { %976 = vmatpush.bf16.msra.mxu3 %v1263_v57 }
 0x1ed   : > { %833 = vmatmul.bf16.gmra.mxu2 %v1260_v8 }
 0x1fd   : > { %838 = vmatmul.bf16.gmra.mxu2 %v1261_v43 }
 0x20d   : > { %843 = vmatmul.bf16.gmra.mxu2 %v1262_v55 }
 0x260   : > { %v829_v59 = vpop.f32.mrf.mxu2 }
 0x261   : > { %v889_v63 = vmul.f32 %v852_v61, %v829_v59 }
 0x268   : > { %v831_v62 = vpop.f32.mrf.mxu2 }
 0x269   : > { %v890_v2 = vmul.f32 %v857_v60, %v831_v62 }
 0x26b   : > { %v897_v3 = vpack.c.bf16 %v890_v2, %v889_v63 }
 0x26d   : > { %977 = vmatmul.bf16.vlgmr.msra.gmra.mxu3 %v897_v3 }
 0x270   : > { %v834_v4 = vpop.f32.mrf.mxu2 }
 0x271   : > { %v891_v51 = vmul.f32 %v862_v49, %v834_v4 }
 0x278   : > { %v836_v6 = vpop.f32.mrf.mxu2 }
 0x279   : > { %v892_v9 = vmul.f32 %v867_v5, %v836_v6 }
 0x27b   : > { %v898_v10 = vpack.c.bf16 %v892_v9, %v891_v51 }
 0x27d   : > { %982 = vmatmul.bf16.gmra.mxu3 %v898_v10 }
 0x280   : > { %v839_v11 = vpop.f32.mrf.mxu2 }
 0x281   : > { %v893_v17 = vmul.f32 %v872_v12, %v839_v11 }
 0x288   : > { %v841_v14 = vpop.f32.mrf.mxu2 }
 0x289   : > { %v894_v18 = vmul.f32 %v877_v13, %v841_v14 }
 0x28b   : > { %v899_v19 = vpack.c.bf16 %v894_v18, %v893_v17 }
 0x28d   : > { %987 = vmatmul.bf16.gmra.mxu3 %v899_v19 }
 0x290   : > { %v844_v56 = vpop.f32.mrf.mxu2 }
 0x291   : > { %v895_v23 = vmul.f32 %v882_v58, %v844_v56 }
 0x298   : > { %v846_v21 = vpop.f32.mrf.mxu2 }
 0x299   : > { %v896_v25 = vmul.f32 %v887_v20, %v846_v21 }
 0x29b   : > { %v900_v26 = vpack.c.bf16 %v896_v25, %v895_v23 }
 0x29d   : > { %992 = vmatmul.bf16.gmra.mxu3 %v900_v26 }
 0x2f0   : > { %v978_v28 = vpop.f32.mrf.mxu3 }
 0x2f1   : > { %v979_v31 = vadd.f32 %v1326_v27, %v978_v28 }
 0x2f3   : > { %v998_v32 = vmax.f32 %v979_v31, 0.0 }
 0x2f5   : > { %1006 = vst [vmem:[%s1714_s26] sm:$0xff] %v998_v32 }
 0x2f8   : > { %v980_v0 = vpop.f32.mrf.mxu3 }
 0x2f9   : > { %v981_v33 = vadd.f32 %v1326_v27, %v980_v0 }
 0x2fb   : > { %v999_v1 = vmax.f32 %v981_v33, 0.0 }
 0x2fd   : > { %1007 = vst [vmem:[%s1714_s26 + $0x8] sm:$0xff] %v999_v1 }
 0x300   : > { %v983_v34 = vpop.f32.mrf.mxu3 }
 0x301   : > { %v984_v36 = vadd.f32 %v1326_v27, %v983_v34 }
 0x303   : > { %v1000_v37 = vmax.f32 %v984_v36, 0.0 }
 0x305   : > { %1008 = vst [vmem:[%s1714_s26 + $0x10] sm:$0xff] %v1000_v37 }
 0x308   : > { %v985_v38 = vpop.f32.mrf.mxu3 }
 0x309   : > { %v986_v39 = vadd.f32 %v1326_v27, %v985_v38 }
 0x30b   : > { %v1001_v40 = vmax.f32 %v986_v39, 0.0 }
 0x30d   : > { %1009 = vst [vmem:[%s1714_s26 + $0x18] sm:$0xff] %v1001_v40 }
 0x310   : > { %v988_v46 = vpop.f32.mrf.mxu3 }
 0x311   : > { %v989_v47 = vadd.f32 %v1326_v27, %v988_v46 }
 0x313   : > { %v1002_v48 = vmax.f32 %v989_v47, 0.0 }
 0x315   : > { %1010 = vst [vmem:[%s1714_s26 + $0x20] sm:$0xff] %v1002_v48 }
 0x318   : > { %v990_v50 = vpop.f32.mrf.mxu3 }
 0x319   : > { %v991_v52 = vadd.f32 %v1326_v27, %v990_v50 }
 0x31b   : > { %v1003_v53 = vmax.f32 %v991_v52, 0.0 }
 0x31d   : > { %1011 = vst [vmem:[%s1714_s26 + $0x28] sm:$0xff] %v1003_v53 }
 0x320   : > { %v993_v54 = vpop.f32.mrf.mxu3 }
 0x321   : > { %v994_v29 = vadd.f32 %v1326_v27, %v993_v54 }
 0x323   : > { %v1004_v30 = vmax.f32 %v994_v29, 0.0 }
 0x325   : > { %1012 = vst [vmem:[%s1714_s26 + $0x30] sm:$0xff] %v1004_v30 }
 0x328   : > { %v995_v22 = vpop.f32.mrf.mxu3 }
 0x329   : > { %v996_v35 = vadd.f32 %v1326_v27, %v995_v22 }
 0x32b   : > { %v1005_v15 = vmax.f32 %v996_v35, 0.0 }
 0x32d   : > { %1013 = vst [vmem:[%s1714_s26 + $0x38] sm:$0xff] %v1005_v15 }
 0x32e   : > { %1354 = shalt.err (!%p1351_p3)
}
 0x32f   : > { %s1392_s25 = smov 128   ;;  %s1393_s26 = smov 8  }
 0x330   : > { %1280 = dma.vmem_to_hbm [thread:$0]  (%p1482_p5), %s1028_s27, 1024, %s1030_s28, %s1015_s14, %s1392_s25, %s1392_s25, %s1393_s26  }
 0x331 PF: > { %p1286_p4 = scmp.ge.s32.totalorder %s1389_s12, 2  ;;  %s1044_s24 = sand.u32 1, %s1377_s30  }
 0x332   : > { %s1045_s1 = scalar_lea.sflag [#allocation3], %s1044_s24 }
 0x333   : > { %p1283_p7 = pnand %p1286_p4, %p1486_p6 }
 0x335   : > { %p1284_p8 = pneg %p1283_p7 }
 0x337   : > { %1372 = dma.done.wait (%p1284_p8), %s1045_s1, 1024  }
 0x338   : > { %1374 = vsyncadd (%p1284_p8), %s1045_s1, 4294966272  ;;  %p19_p9 = scmp.ge.s32.totalorder %s1469_s15, 4   ;;  %s1772_s30 = smov %s1381_s10 }
 0x339   : > { %s1773_s10 = smov %s1385_s11  ;;  %s1774_s11 = smov %s1480_s18 }
 0x33a   : > { %s1775_s12 = smov %s1469_s15  ;;  %21 = sbr.rel (!%p19_p9) target bundleno = 5 (0x5), region = 94 }
 0x33f   :  { %1051 = vsyncpa [#allocation3], 1 }
 0x340   :  { %1053 = vsyncpa [#allocation3 + $0x1], 1 }

</bundles_post_ra>
